<compile_context>
chip_gen: v6e
topology: v6e:2x2x1
jax: 0.10.0
libtpu: 0.0.40
codegen_flags: <defaults>
</compile_context>

<pallas_src>
import jax
import jax.numpy as jnp
from jax.experimental import pallas as pl
from jax.experimental.pallas import tpu as pltpu


LANE = 128      # vreg lane width (last dim)
SUBLANE = 8     # vreg sublane width (second-to-last dim)


def _round_up(n, m):
    return ((n + m - 1) // m) * m


def _cdiv(a, b):
    return (a + b - 1) // b


def _pad2d(a, rows, cols):
    r, c = a.shape
    return jnp.pad(a, ((0, rows - r), (0, cols - c)))


def _vae_kernel(
    x_ref, eps_ref,
    w_e1, b_e1, w_e2, b_e2,               # encoder: Linear+ReLU, Linear+ReLU
    w_h, b_h,                             # fused (mu | logvar) head
    w_d1, b_d1, w_d2, b_d2, w_d3, b_d3,   # decoder: Linear+ReLU x2, Linear+Sigmoid
    recon_ref, head_ref,
):
    f32 = jnp.float32
    bf16 = jnp.bfloat16

    def dense(act, w_ref, b_ref):
        # bf16 operands on the MXU, f32 accumulation; bias add stays f32.
        return jnp.dot(act.astype(bf16), w_ref[...],
                       preferred_element_type=f32) + b_ref[...]

    x = x_ref[...]                         # already bf16 (cast in wrapper)

    # ---- encoder ----
    h = jnp.maximum(dense(x, w_e1, b_e1), 0.0)
    h = jnp.maximum(dense(h, w_e2, b_e2), 0.0)

    # ---- fused latent heads: one matmul -> split at lane-aligned boundary ----
    lp = eps_ref.shape[-1]                 # padded latent width (multiple of 128)
    head = dense(h, w_h, b_h)              # [TB, 2*lp] == (mu | logvar)
    mu = head[:, :lp]
    logvar = head[:, lp:]

    # ---- reparameterize: z = mu + eps * exp(0.5 * logvar)  (all f32) ----
    z = mu + eps_ref[...] * jnp.exp(0.5 * logvar)

    # ---- decoder ----
    d = jnp.maximum(dense(z, w_d1, b_d1), 0.0)
    d = jnp.maximum(dense(d, w_d2, b_d2), 0.0)
    d = dense(d, w_d3, b_d3)
    # sigmoid in tanh form: one EUP op per element instead of exp + reciprocal
    recon = 0.5 * jnp.tanh(0.5 * d) + 0.5

    recon_ref[...] = recon.astype(recon_ref.dtype)
    head_ref[...] = head.astype(head_ref.dtype)


def init_vae_params(key, input_dim, hidden_dim, latent_dim):
    """Deterministic synthetic parameters. Weights stored as [in, out]."""
    half = hidden_dim // 2
    layer_dims = [
        ("e1", input_dim, hidden_dim),
        ("e2", hidden_dim, half),
        ("mu", half, latent_dim),
        ("lv", half, latent_dim),
        ("d1", latent_dim, half),
        ("d2", half, hidden_dim),
        ("d3", hidden_dim, input_dim),
    ]
    params = {}
    for name, din, dout in layer_dims:
        key, kw, kb = jax.random.split(key, 3)
        scale = 1.0 / jnp.sqrt(jnp.float32(din))   # ~ torch Linear default range
        params[f"w_{name}"] = jax.random.uniform(
            kw, (din, dout), jnp.float32, minval=-scale, maxval=scale)
        params[f"b_{name}"] = jax.random.uniform(
            kb, (1, dout), jnp.float32, minval=-scale, maxval=scale)
    return params


def vae_forward(x, eps, params, *, latent_dim, batch_tile=512):
    B, D = x.shape
    L = latent_dim
    H = params["w_e1"].shape[1]
    HALF = params["w_e2"].shape[1]

    # lane-dense (128-multiple) feature dims
    Dp = _round_up(D, LANE)
    Hp = _round_up(H, LANE)
    HALFp = _round_up(HALF, LANE)
    Lp = _round_up(L, LANE)

    # Batch tiling: at least 2 tiles (v7x dual-TC sharding + DMA/compute
    # pipelining), even split so padding is at most one sublane group.
    num_tiles = max(2, _cdiv(B, batch_tile))
    TB = _round_up(_cdiv(B, num_tiles), SUBLANE)
    Bp = TB * num_tiles

    # zero-padded activations / noise (zeros keep padded lanes inert end-to-end)
    xp = _pad2d(x, Bp, Dp).astype(jnp.bfloat16)    # MXU operand only -> stream bf16
    epsp = _pad2d(eps, Bp, Lp)                     # elementwise path stays f32

    # zero-pad weights (cast to bf16 for the MXU) and biases (stay f32)
    def w(name, din, dout):
        return _pad2d(params[f"w_{name}"], din, dout).astype(jnp.bfloat16)

    def b(name, dout):
        return _pad2d(params[f"b_{name}"], 1, dout)

    # fused mu|logvar head: [HALFp, 2*Lp]
    w_h = jnp.concatenate([w("mu", HALFp, Lp), w("lv", HALFp, Lp)], axis=1)
    b_h = jnp.concatenate([b("mu", Lp), b("lv", Lp)], axis=1)

    weights = [
        w("e1", Dp, Hp), b("e1", Hp),
        w("e2", Hp, HALFp), b("e2", HALFp),
        w_h, b_h,
        w("d1", Lp, HALFp), b("d1", HALFp),
        w("d2", HALFp, Hp), b("d2", Hp),
        w("d3", Hp, Dp), b("d3", Dp),
    ]

    grid = (num_tiles,)

    def batch_spec(feat):
        return pl.BlockSpec((TB, feat), lambda i: (i, 0))

    def resident_spec(arr):
        r, c = arr.shape
        return pl.BlockSpec((r, c), lambda i: (0, 0))  # constant -> fetched once

    in_specs = [batch_spec(Dp), batch_spec(Lp)] + [resident_spec(a) for a in weights]
    out_specs = (batch_spec(Dp), batch_spec(2 * Lp))

    out_shape = (
        jax.ShapeDtypeStruct((Bp, Dp), jnp.float32),       # reconstructed
        jax.ShapeDtypeStruct((Bp, 2 * Lp), jnp.float32),   # (mu | logvar) slab
    )

    # ---- VMEM budget derived from actual tile sizes (cap at v7x 64 MiB/TC) ----
    weight_bytes = sum(int(a.size) * a.dtype.itemsize for a in weights)
    tile_io_bytes = (TB * Dp * 2        # x tile (bf16)
                     + TB * Lp * 4      # eps tile
                     + TB * Dp * 4      # recon tile
                     + TB * 2 * Lp * 4)  # head tile
    interm_bytes = TB * (Hp + HALFp + 2 * Lp + HALFp + Hp + Dp) * 4
    vmem_needed = 2 * weight_bytes + 2 * tile_io_bytes + 2 * interm_bytes
    vmem_limit = int(min(64 * 1024 * 1024,
                         max(32 * 1024 * 1024, vmem_needed + (4 << 20))))

    # advisory cost hint for XLA scheduling around the custom call
    mm_flops = 2 * Bp * (Dp * Hp + Hp * HALFp + HALFp * 2 * Lp
                         + Lp * HALFp + HALFp * Hp + Hp * Dp)
    transcendentals = Bp * (Lp + Dp)                       # exp in reparam + tanh
    bytes_acts = (int(xp.size) * 2 + int(epsp.size) * 4
                  + Bp * Dp * 4 + Bp * 2 * Lp * 4)
    cost = pl.CostEstimate(
        flops=int(mm_flops),
        transcendentals=int(transcendentals),
        bytes_accessed=int(weight_bytes + bytes_acts),
    )

    recon_p, head_p = pl.pallas_call(
        _vae_kernel,
        out_shape=out_shape,
        grid=grid,
        in_specs=in_specs,
        out_specs=out_specs,
        compiler_params=pltpu.CompilerParams(
            dimension_semantics=("parallel",),             # shards batch tiles
            vmem_limit_bytes=vmem_limit,
        ),
        cost_estimate=cost,
    )(xp, epsp, *weights)

    # slice the zero-padded lanes / rows back off; split the fused head slab
    recon = recon_p[:B, :D]
    mu = head_p[:B, :L]
    logvar = head_p[:B, Lp:Lp + L]
    return recon, mu, logvar


def vae_forward_ref(x, eps, params):
    """Pure-JAX f32 reference (same math) for a sanity check."""
    relu = lambda v: jnp.maximum(v, 0.0)
    h = relu(x @ params["w_e1"] + params["b_e1"])
    h = relu(h @ params["w_e2"] + params["b_e2"])
    mu = h @ params["w_mu"] + params["b_mu"]
    logvar = h @ params["w_lv"] + params["b_lv"]
    z = mu + eps * jnp.exp(0.5 * logvar)
    d = relu(z @ params["w_d1"] + params["b_d1"])
    d = relu(d @ params["w_d2"] + params["b_d2"])
    d = jax.nn.sigmoid(d @ params["w_d3"] + params["b_d3"])
    return d, mu, logvar


if __name__ == "__main__":
    # Small, module-consistent shapes: x is [batch, input_dim]
    batch, input_dim, hidden_dim, latent_dim = 8, 16, 32, 8

    key = jax.random.PRNGKey(0)
    k_params, k_x, k_eps = jax.random.split(key, 3)

    params = init_vae_params(k_params, input_dim, hidden_dim, latent_dim)
    x = jax.random.normal(k_x, (batch, input_dim), jnp.float32)
    eps = jax.random.normal(k_eps, (batch, latent_dim), jnp.float32)

    recon, mu, logvar = vae_forward(x, eps, params, latent_dim=latent_dim)
    jax.block_until_ready((recon, mu, logvar))

    assert recon.shape == (batch, input_dim)
    assert mu.shape == (batch, latent_dim)
    assert logvar.shape == (batch, latent_dim)

    # correctness vs pure-f32 reference; bf16 MXU operands -> loose tolerance
    recon_r, mu_r, logvar_r = vae_forward_ref(x, eps, params)
    assert jnp.allclose(recon, recon_r, atol=5e-2, rtol=5e-2)
    assert jnp.allclose(mu, mu_r, atol=5e-2, rtol=5e-2)
    assert jnp.allclose(logvar, logvar_r, atol=5e-2, rtol=5e-2)

    print("KERNEL_OK")
</pallas_src>

<mosaic_0001>
module attributes {stable_mosaic.version = 11 : i64} {
  func.func @_vae_kernel(%arg0: i32, %arg1: memref<8x128xbf16, #tpu.memory_space<vmem>>, %arg2: memref<8x128xf32, #tpu.memory_space<vmem>>, %arg3: memref<128x128xbf16, #tpu.memory_space<vmem>>, %arg4: memref<1x128xf32, #tpu.memory_space<vmem>>, %arg5: memref<128x128xbf16, #tpu.memory_space<vmem>>, %arg6: memref<1x128xf32, #tpu.memory_space<vmem>>, %arg7: memref<128x256xbf16, #tpu.memory_space<vmem>>, %arg8: memref<1x256xf32, #tpu.memory_space<vmem>>, %arg9: memref<128x128xbf16, #tpu.memory_space<vmem>>, %arg10: memref<1x128xf32, #tpu.memory_space<vmem>>, %arg11: memref<128x128xbf16, #tpu.memory_space<vmem>>, %arg12: memref<1x128xf32, #tpu.memory_space<vmem>>, %arg13: memref<128x128xbf16, #tpu.memory_space<vmem>>, %arg14: memref<1x128xf32, #tpu.memory_space<vmem>>, %arg15: memref<8x128xf32, #tpu.memory_space<vmem>>, %arg16: memref<8x256xf32, #tpu.memory_space<vmem>>) attributes {dimension_semantics = [#tpu.dimension_semantics<parallel>], iteration_bounds = array<i64: 2>, scalar_prefetch = 0 : i64, scratch_operands = 0 : i64, tpu.core_type = #tpu.core_type<tc>, window_params = [{transform_indices = @transform_0, window_bounds = array<i64: 8, 128>}, {transform_indices = @transform_1, window_bounds = array<i64: 8, 128>}, {pipeline_mode = #tpu.pipeline_mode<synchronous>, transform_indices = @transform_2, window_bounds = array<i64: 128, 128>}, {pipeline_mode = #tpu.pipeline_mode<synchronous>, transform_indices = @transform_3, window_bounds = array<i64: 1, 128>}, {pipeline_mode = #tpu.pipeline_mode<synchronous>, transform_indices = @transform_4, window_bounds = array<i64: 128, 128>}, {pipeline_mode = #tpu.pipeline_mode<synchronous>, transform_indices = @transform_5, window_bounds = array<i64: 1, 128>}, {pipeline_mode = #tpu.pipeline_mode<synchronous>, transform_indices = @transform_6, window_bounds = array<i64: 128, 256>}, {pipeline_mode = #tpu.pipeline_mode<synchronous>, transform_indices = @transform_7, window_bounds = array<i64: 1, 256>}, {pipeline_mode = #tpu.pipeline_mode<synchronous>, transform_indices = @transform_8, window_bounds = array<i64: 128, 128>}, {pipeline_mode = #tpu.pipeline_mode<synchronous>, transform_indices = @transform_9, window_bounds = array<i64: 1, 128>}, {pipeline_mode = #tpu.pipeline_mode<synchronous>, transform_indices = @transform_10, window_bounds = array<i64: 128, 128>}, {pipeline_mode = #tpu.pipeline_mode<synchronous>, transform_indices = @transform_11, window_bounds = array<i64: 1, 128>}, {pipeline_mode = #tpu.pipeline_mode<synchronous>, transform_indices = @transform_12, window_bounds = array<i64: 128, 128>}, {pipeline_mode = #tpu.pipeline_mode<synchronous>, transform_indices = @transform_13, window_bounds = array<i64: 1, 128>}, {transform_indices = @transform_14, window_bounds = array<i64: 8, 128>}, {transform_indices = @transform_15, window_bounds = array<i64: 8, 256>}]} {
    %c0 = arith.constant 0 : index
    %c0_0 = arith.constant 0 : index
    %0 = vector.load %arg1[%c0, %c0_0] : memref<8x128xbf16, #tpu.memory_space<vmem>>, vector<8x128xbf16>
    %c0_1 = arith.constant 0 : index
    %c0_2 = arith.constant 0 : index
    %1 = vector.load %arg3[%c0_1, %c0_2] : memref<128x128xbf16, #tpu.memory_space<vmem>>, vector<128x128xbf16>
    %cst = arith.constant dense<0.000000e+00> : vector<8x128xf32>
    %2 = tpu.matmul %0, %1, %cst {dimension_numbers = #tpu.dot_dimension_numbers<[1], [0], [0], [1], [0, 0, 1, 1], [], []>} : vector<8x128xbf16>, vector<128x128xbf16>, vector<8x128xf32> -> vector<8x128xf32>
    %c0_3 = arith.constant 0 : index
    %c0_4 = arith.constant 0 : index
    %3 = vector.load %arg4[%c0_3, %c0_4] : memref<1x128xf32, #tpu.memory_space<vmem>>, vector<1x128xf32>
    %4 = vector.broadcast %3 : vector<1x128xf32> to vector<8x128xf32>
    %5 = arith.addf %2, %4 : vector<8x128xf32>
    %cst_5 = arith.constant 0.000000e+00 : f32
    %6 = vector.broadcast %cst_5 : f32 to vector<8x128xf32>
    %7 = arith.maximumf %5, %6 : vector<8x128xf32>
    %8 = arith.truncf %7 : vector<8x128xf32> to vector<8x128xbf16>
    %c0_6 = arith.constant 0 : index
    %c0_7 = arith.constant 0 : index
    %9 = vector.load %arg5[%c0_6, %c0_7] : memref<128x128xbf16, #tpu.memory_space<vmem>>, vector<128x128xbf16>
    %cst_8 = arith.constant dense<0.000000e+00> : vector<8x128xf32>
    %10 = tpu.matmul %8, %9, %cst_8 {dimension_numbers = #tpu.dot_dimension_numbers<[1], [0], [0], [1], [0, 0, 1, 1], [], []>} : vector<8x128xbf16>, vector<128x128xbf16>, vector<8x128xf32> -> vector<8x128xf32>
    %c0_9 = arith.constant 0 : index
    %c0_10 = arith.constant 0 : index
    %11 = vector.load %arg6[%c0_9, %c0_10] : memref<1x128xf32, #tpu.memory_space<vmem>>, vector<1x128xf32>
    %12 = vector.broadcast %11 : vector<1x128xf32> to vector<8x128xf32>
    %13 = arith.addf %10, %12 : vector<8x128xf32>
    %cst_11 = arith.constant 0.000000e+00 : f32
    %14 = vector.broadcast %cst_11 : f32 to vector<8x128xf32>
    %15 = arith.maximumf %13, %14 : vector<8x128xf32>
    %16 = arith.truncf %15 : vector<8x128xf32> to vector<8x128xbf16>
    %c0_12 = arith.constant 0 : index
    %c0_13 = arith.constant 0 : index
    %17 = vector.load %arg7[%c0_12, %c0_13] : memref<128x256xbf16, #tpu.memory_space<vmem>>, vector<128x256xbf16>
    %cst_14 = arith.constant dense<0.000000e+00> : vector<8x256xf32>
    %18 = tpu.matmul %16, %17, %cst_14 {dimension_numbers = #tpu.dot_dimension_numbers<[1], [0], [0], [1], [0, 0, 1, 1], [], []>} : vector<8x128xbf16>, vector<128x256xbf16>, vector<8x256xf32> -> vector<8x256xf32>
    %c0_15 = arith.constant 0 : index
    %c0_16 = arith.constant 0 : index
    %19 = vector.load %arg8[%c0_15, %c0_16] : memref<1x256xf32, #tpu.memory_space<vmem>>, vector<1x256xf32>
    %20 = vector.broadcast %19 : vector<1x256xf32> to vector<8x256xf32>
    %21 = arith.addf %18, %20 : vector<8x256xf32>
    %22 = vector.extract_strided_slice %21 {offsets = [0, 0], sizes = [8, 128], strides = [1, 1]} : vector<8x256xf32> to vector<8x128xf32>
    %23 = vector.extract_strided_slice %21 {offsets = [0, 128], sizes = [8, 128], strides = [1, 1]} : vector<8x256xf32> to vector<8x128xf32>
    %c0_17 = arith.constant 0 : index
    %c0_18 = arith.constant 0 : index
    %24 = vector.load %arg2[%c0_17, %c0_18] : memref<8x128xf32, #tpu.memory_space<vmem>>, vector<8x128xf32>
    %cst_19 = arith.constant 5.000000e-01 : f32
    %25 = vector.broadcast %cst_19 : f32 to vector<8x128xf32>
    %26 = arith.mulf %25, %23 : vector<8x128xf32>
    %27 = math.exp %26 : vector<8x128xf32>
    %28 = arith.mulf %24, %27 : vector<8x128xf32>
    %29 = arith.addf %22, %28 : vector<8x128xf32>
    %30 = arith.truncf %29 : vector<8x128xf32> to vector<8x128xbf16>
    %c0_20 = arith.constant 0 : index
    %c0_21 = arith.constant 0 : index
    %31 = vector.load %arg9[%c0_20, %c0_21] : memref<128x128xbf16, #tpu.memory_space<vmem>>, vector<128x128xbf16>
    %cst_22 = arith.constant dense<0.000000e+00> : vector<8x128xf32>
    %32 = tpu.matmul %30, %31, %cst_22 {dimension_numbers = #tpu.dot_dimension_numbers<[1], [0], [0], [1], [0, 0, 1, 1], [], []>} : vector<8x128xbf16>, vector<128x128xbf16>, vector<8x128xf32> -> vector<8x128xf32>
    %c0_23 = arith.constant 0 : index
    %c0_24 = arith.constant 0 : index
    %33 = vector.load %arg10[%c0_23, %c0_24] : memref<1x128xf32, #tpu.memory_space<vmem>>, vector<1x128xf32>
    %34 = vector.broadcast %33 : vector<1x128xf32> to vector<8x128xf32>
    %35 = arith.addf %32, %34 : vector<8x128xf32>
    %cst_25 = arith.constant 0.000000e+00 : f32
    %36 = vector.broadcast %cst_25 : f32 to vector<8x128xf32>
    %37 = arith.maximumf %35, %36 : vector<8x128xf32>
    %38 = arith.truncf %37 : vector<8x128xf32> to vector<8x128xbf16>
    %c0_26 = arith.constant 0 : index
    %c0_27 = arith.constant 0 : index
    %39 = vector.load %arg11[%c0_26, %c0_27] : memref<128x128xbf16, #tpu.memory_space<vmem>>, vector<128x128xbf16>
    %cst_28 = arith.constant dense<0.000000e+00> : vector<8x128xf32>
    %40 = tpu.matmul %38, %39, %cst_28 {dimension_numbers = #tpu.dot_dimension_numbers<[1], [0], [0], [1], [0, 0, 1, 1], [], []>} : vector<8x128xbf16>, vector<128x128xbf16>, vector<8x128xf32> -> vector<8x128xf32>
    %c0_29 = arith.constant 0 : index
    %c0_30 = arith.constant 0 : index
    %41 = vector.load %arg12[%c0_29, %c0_30] : memref<1x128xf32, #tpu.memory_space<vmem>>, vector<1x128xf32>
    %42 = vector.broadcast %41 : vector<1x128xf32> to vector<8x128xf32>
    %43 = arith.addf %40, %42 : vector<8x128xf32>
    %cst_31 = arith.constant 0.000000e+00 : f32
    %44 = vector.broadcast %cst_31 : f32 to vector<8x128xf32>
    %45 = arith.maximumf %43, %44 : vector<8x128xf32>
    %46 = arith.truncf %45 : vector<8x128xf32> to vector<8x128xbf16>
    %c0_32 = arith.constant 0 : index
    %c0_33 = arith.constant 0 : index
    %47 = vector.load %arg13[%c0_32, %c0_33] : memref<128x128xbf16, #tpu.memory_space<vmem>>, vector<128x128xbf16>
    %cst_34 = arith.constant dense<0.000000e+00> : vector<8x128xf32>
    %48 = tpu.matmul %46, %47, %cst_34 {dimension_numbers = #tpu.dot_dimension_numbers<[1], [0], [0], [1], [0, 0, 1, 1], [], []>} : vector<8x128xbf16>, vector<128x128xbf16>, vector<8x128xf32> -> vector<8x128xf32>
    %c0_35 = arith.constant 0 : index
    %c0_36 = arith.constant 0 : index
    %49 = vector.load %arg14[%c0_35, %c0_36] : memref<1x128xf32, #tpu.memory_space<vmem>>, vector<1x128xf32>
    %50 = vector.broadcast %49 : vector<1x128xf32> to vector<8x128xf32>
    %51 = arith.addf %48, %50 : vector<8x128xf32>
    %cst_37 = arith.constant 5.000000e-01 : f32
    %52 = vector.broadcast %cst_37 : f32 to vector<8x128xf32>
    %53 = arith.mulf %52, %51 : vector<8x128xf32>
    %54 = math.tanh %53 : vector<8x128xf32>
    %cst_38 = arith.constant 5.000000e-01 : f32
    %55 = vector.broadcast %cst_38 : f32 to vector<8x128xf32>
    %56 = arith.mulf %55, %54 : vector<8x128xf32>
    %cst_39 = arith.constant 5.000000e-01 : f32
    %57 = vector.broadcast %cst_39 : f32 to vector<8x128xf32>
    %58 = arith.addf %56, %57 : vector<8x128xf32>
    %c0_40 = arith.constant 0 : index
    %c0_41 = arith.constant 0 : index
    %59 = vector.load %arg15[%c0_40, %c0_41] : memref<8x128xf32, #tpu.memory_space<vmem>>, vector<8x128xf32>
    tpu.vector_store %arg15[%c0_40, %c0_41], %58 {strides = array<i32>} : memref<8x128xf32, #tpu.memory_space<vmem>>, vector<8x128xf32>,
    %c0_42 = arith.constant 0 : index
    %c0_43 = arith.constant 0 : index
    %60 = vector.load %arg16[%c0_42, %c0_43] : memref<8x256xf32, #tpu.memory_space<vmem>>, vector<8x256xf32>
    tpu.vector_store %arg16[%c0_42, %c0_43], %21 {strides = array<i32>} : memref<8x256xf32, #tpu.memory_space<vmem>>, vector<8x256xf32>,
    return
  }
  func.func @transform_0(%arg0: i32) -> (i32, i32) {
    %c0_i32 = arith.constant 0 : i32
    %c0_i32_0 = arith.constant 0 : i32
    return %arg0, %c0_i32 : i32, i32
  }
  func.func @transform_1(%arg0: i32) -> (i32, i32) {
    %c0_i32 = arith.constant 0 : i32
    %c0_i32_0 = arith.constant 0 : i32
    return %arg0, %c0_i32 : i32, i32
  }
  func.func @transform_2(%arg0: i32) -> (i32, i32) {
    %c0_i32 = arith.constant 0 : i32
    %c0_i32_0 = arith.constant 0 : i32
    %c0_i32_1 = arith.constant 0 : i32
    return %c0_i32, %c0_i32_0 : i32, i32
  }
  func.func @transform_3(%arg0: i32) -> (i32, i32) {
    %c0_i32 = arith.constant 0 : i32
    %c0_i32_0 = arith.constant 0 : i32
    %c0_i32_1 = arith.constant 0 : i32
    return %c0_i32, %c0_i32_0 : i32, i32
  }
  func.func @transform_4(%arg0: i32) -> (i32, i32) {
    %c0_i32 = arith.constant 0 : i32
    %c0_i32_0 = arith.constant 0 : i32
    %c0_i32_1 = arith.constant 0 : i32
    return %c0_i32, %c0_i32_0 : i32, i32
  }
  func.func @transform_5(%arg0: i32) -> (i32, i32) {
    %c0_i32 = arith.constant 0 : i32
    %c0_i32_0 = arith.constant 0 : i32
    %c0_i32_1 = arith.constant 0 : i32
    return %c0_i32, %c0_i32_0 : i32, i32
  }
  func.func @transform_6(%arg0: i32) -> (i32, i32) {
    %c0_i32 = arith.constant 0 : i32
    %c0_i32_0 = arith.constant 0 : i32
    %c0_i32_1 = arith.constant 0 : i32
    return %c0_i32, %c0_i32_0 : i32, i32
  }
  func.func @transform_7(%arg0: i32) -> (i32, i32) {
    %c0_i32 = arith.constant 0 : i32
    %c0_i32_0 = arith.constant 0 : i32
    %c0_i32_1 = arith.constant 0 : i32
    return %c0_i32, %c0_i32_0 : i32, i32
  }
  func.func @transform_8(%arg0: i32) -> (i32, i32) {
    %c0_i32 = arith.constant 0 : i32
    %c0_i32_0 = arith.constant 0 : i32
    %c0_i32_1 = arith.constant 0 : i32
    return %c0_i32, %c0_i32_0 : i32, i32
  }
  func.func @transform_9(%arg0: i32) -> (i32, i32) {
    %c0_i32 = arith.constant 0 : i32
    %c0_i32_0 = arith.constant 0 : i32
    %c0_i32_1 = arith.constant 0 : i32
    return %c0_i32, %c0_i32_0 : i32, i32
  }
  func.func @transform_10(%arg0: i32) -> (i32, i32) {
    %c0_i32 = arith.constant 0 : i32
    %c0_i32_0 = arith.constant 0 : i32
    %c0_i32_1 = arith.constant 0 : i32
    return %c0_i32, %c0_i32_0 : i32, i32
  }
  func.func @transform_11(%arg0: i32) -> (i32, i32) {
    %c0_i32 = arith.constant 0 : i32
    %c0_i32_0 = arith.constant 0 : i32
    %c0_i32_1 = arith.constant 0 : i32
    return %c0_i32, %c0_i32_0 : i32, i32
  }
  func.func @transform_12(%arg0: i32) -> (i32, i32) {
    %c0_i32 = arith.constant 0 : i32
    %c0_i32_0 = arith.constant 0 : i32
    %c0_i32_1 = arith.constant 0 : i32
    return %c0_i32, %c0_i32_0 : i32, i32
  }
  func.func @transform_13(%arg0: i32) -> (i32, i32) {
    %c0_i32 = arith.constant 0 : i32
    %c0_i32_0 = arith.constant 0 : i32
    %c0_i32_1 = arith.constant 0 : i32
    return %c0_i32, %c0_i32_0 : i32, i32
  }
  func.func @transform_14(%arg0: i32) -> (i32, i32) {
    %c0_i32 = arith.constant 0 : i32
    %c0_i32_0 = arith.constant 0 : i32
    return %arg0, %c0_i32 : i32, i32
  }
  func.func @transform_15(%arg0: i32) -> (i32, i32) {
    %c0_i32 = arith.constant 0 : i32
    %c0_i32_0 = arith.constant 0 : i32
    return %arg0, %c0_i32 : i32, i32
  }
}

</mosaic_0001>

<bundles_post_ra>
// kernel: tpu_custom_call.1
= control target key start
LH: loop header
LB: loop body
LE: loop exit
PB: predicated region body
PF: predicated region fallthrough
CT: control target
= control target key end

     0   :  { %s2836_s0 = inlined_call_operand.hbm [shape: bf16[16,128], index: 0, kind: input, shape index: {}]   ;;  %s2837_s1 = inlined_call_operand.hbm [shape: f32[16,128], index: 1, kind: input, shape index: {}]   ;;  %s2838_s2 = inlined_call_operand.hbm [shape: bf16[128,128], index: 2, kind: input, shape index: {}]   ;;  %s2839_s3 = inlined_call_operand.vmem [shape: f32[1,128], index: 3, kind: input, shape index: {}]   ;;  %s2840_s4 = inlined_call_operand.hbm [shape: bf16[128,128], index: 4, kind: input, shape index: {}]   ;;  %s2841_s5 = inlined_call_operand.vmem [shape: f32[1,128], index: 5, kind: input, shape index: {}]   ;;  %s2842_s6 = inlined_call_operand.hbm [shape: bf16[128,256], index: 6, kind: input, shape index: {}]   ;;  %s2843_s7 = inlined_call_operand.vmem [shape: f32[1,256], index: 7, kind: input, shape index: {}]   ;;  %s2844_s8 = inlined_call_operand.hbm [shape: bf16[128,128], index: 8, kind: input, shape index: {}]   ;;  %s2845_s9 = inlined_call_operand.vmem [shape: f32[1,128], index: 9, kind: input, shape index: {}]   ;;  %s2846_s10 = inlined_call_operand.hbm [shape: bf16[128,128], index: 10, kind: input, shape index: {}]   ;;  %s2847_s11 = inlined_call_operand.vmem [shape: f32[1,128], index: 11, kind: input, shape index: {}]   ;;  %s2848_s12 = inlined_call_operand.hbm [shape: bf16[128,128], index: 12, kind: input, shape index: {}]   ;;  %s2849_s13 = inlined_call_operand.vmem [shape: f32[1,128], index: 13, kind: input, shape index: {}]   ;;  %s2850_s14 = inlined_call_operand.hbm [shape: f32[16,128], index: 14, kind: output, shape index: {0}]   ;;  %s2851_s15 = inlined_call_operand.hbm [shape: f32[16,256], index: 15, kind: output, shape index: {1}]  }
   0x1   :  { %2862 = sst [smem:[#allocation29_spill]] %s2836_s0 }
   0x2   :  { %2863 = sst [smem:[#allocation30_spill]] %s2838_s2 }
   0x3   :  { %2864 = sst [smem:[#allocation31_spill]] %s2840_s4 }
   0x4   :  { %2865 = sst [smem:[#allocation32_spill]] %s2842_s6 }
   0x5   :  { %2866 = sst [smem:[#allocation33_spill]] %s2844_s8 }
   0x6   :  { %2867 = sst [smem:[#allocation34_spill]] %s2846_s10 }
   0x7   :  { %2868 = sst [smem:[#allocation35_spill]] %s2848_s12 }
   0x8   :  { %2869 = sst [smem:[#allocation36_spill]] %s2849_s13 }
   0x9   :  { %2870 = sst [smem:[#allocation37_spill]] %s2850_s14 }
   0xa   :  { %21 = vsyncpa [#allocation3], 0 }
   0xb   :  { %23 = vsyncpa [#allocation3 + $0x1], 0 }
   0xc   :  { %24 = vsyncpa [#allocation6], 0 }
   0xd   :  { %26 = vsyncpa [#allocation6 + $0x1], 0 }
   0xe   :  { %27 = vsyncpa [#allocation9], 0 }
   0xf   :  { %28 = vsyncpa [#allocation12], 0 }
  0x10   :  { %29 = vsyncpa [#allocation15], 0 }
  0x11   :  { %30 = vsyncpa [#allocation4], 0 }
  0x12   :  { %32 = vsyncpa [#allocation4 + $0x1], 0 }
  0x13   :  { %33 = vsyncpa [#allocation18], 0 }
  0x14   :  { %35 = vsyncpa [#allocation18 + $0x1], 0  ;;  %s2443_s18 = smov 0   ;;  %s2445_s19 = smov 0  }
  0x15   :  { %s2447_s20 = smov 0   ;;  %s2449_s21 = smov 0  }
  0x16 LB: > { %2871 = sst [smem:[#allocation27_spill]] %s2340_s20  ;;  %s2346_s22 = smov [#allocation7]   ;;  %s2344_s21 = sphi %s2449_s21, %s2911_s21   ;;  %s2340_s20 = sphi %s2447_s20, %s2908_s20   ;;  %s2336_s19 = sphi %s2445_s19, %s2910_s19   ;;  %s2332_s18 = sphi %s2443_s18, %s2909_s18  }
  0x17   : > { %s414_s23 = sshll.u32 %s2346_s22, 4  ;;  %s2464_s24 = sadd.s32 4294967295, %s2344_s21   ;;  %s415_s23 = int_to_ptr.vmem [resolvable:$true] %s414_s23 }
  0x18   : > { %p1589_p0 = scmp.ge.s32.totalorder %s2344_s21, 1  ;;  %p2857_p1 = scmp.eq.s32.totalorder %s2464_s24, 0 }
  0x19   : > { %p402_p2 = scmp.lt.s32.totalorder %s2344_s21, 3  ;;  %s2347_s26 = smov [#allocation8]  }
  0x1a   : > { %s430_s27 = sshll.u32 %s2347_s26, 4  ;;  %s2348_s29 = smov [#allocation11]   ;;  %s2482_s27 = int_to_ptr.vmem [resolvable:$true] %s430_s27 }
  0x1b   : > { %p2469_p3 = pnand %p1589_p0, %p402_p2  ;;  %s462_s30 = sshll.u32 %s2348_s29, 4  ;;  %s2484_s30 = int_to_ptr.vmem [resolvable:$true] %s462_s30 }
  0x1c   : > { %s2029_s17 = scalar_lea.vmem %s415_s23, 1024  ;;  %p2037_p11 = scmp.lt.s32.totalorder %s415_s23, %s415_s23 }
  0x1d   : > { %s2872_s25 = scalar_select %p2469_p3, 1, 0 }
  0x1e   : > { %p1858_p5 = pneg %p2469_p3  ;;  %p2030_p8 = scmp.ne.s32.totalorder %s415_s23, %s2029_s17 }
  0x1f   : > { %p2038_p12 = scmp.lt.s32.totalorder %s2029_s17, %s2029_s17 }
  0x20   : > { %p2478_p6 = pnand %p1858_p5, %p2857_p1 }
  0x21   : > { %p2039_p13 = por %p2038_p12, %p2037_p11 }
  0x22   : > { %p2488_p7 = pneg %p2478_p6 }
  0x24   : > { %p2032_p9 = pnand %p2030_p8, %p2488_p7 }
  0x26   : > { %p2033_p10 = pneg %p2032_p9 }
  0x28   : > { %p2040_p0 = pnand %p2039_p13, %p2033_p10 }
  0x2a   : > { %2043 = shalt.err (!%p2040_p0)
}
  0x2b   : > { %s2853_s22 = smov 64   ;;  %s2855_s26 = smov 4  }
  0x2c   : > { %s2875_s2 = sld [smem:[#allocation30_spill]]  ;;  %s2055_s13 = scalar_lea.vmem %s2482_s27, 1024 }
  0x2d   : > { %p2056_p2 = scmp.ne.s32.totalorder %s2482_s27, %s2055_s13  ;;  %p2063_p9 = scmp.lt.s32.totalorder %s2482_s27, %s2482_s27 }
  0x2e   : > { %p2064_p10 = scmp.lt.s32.totalorder %s2055_s13, %s2055_s13 }
  0x2f   : > { %p2058_p5 = pnand %p2056_p2, %p2488_p7 }
  0x30   : > { %p2065_p11 = por %p2064_p10, %p2063_p9 }
  0x31   : > { %p2059_p8 = pneg %p2058_p5 }
  0x32   : > { %1861 = dma.hbm_to_vmem [thread:$0]  (!%p2478_p6), %s2875_s2, 1024, %s415_s23, [#allocation6], %s2853_s22, %s2853_s22, %s2855_s26  }
  0x33   : > { %p2066_p12 = pnand %p2065_p11, %p2059_p8 }
  0x35   : > { %2069 = shalt.err (!%p2066_p12)
}
  0x36   : > { %s2876_s4 = sld [smem:[#allocation31_spill]]  ;;  %s2081_s23 = scalar_lea.vmem %s2484_s30, 1024 }
  0x37   : > { %p2082_p13 = scmp.ne.s32.totalorder %s2484_s30, %s2081_s23  ;;  %p2089_p5 = scmp.lt.s32.totalorder %s2484_s30, %s2484_s30 }
  0x38   : > { %p2090_p8 = scmp.lt.s32.totalorder %s2081_s23, %s2081_s23 }
  0x39   : > { %p2084_p0 = pnand %p2082_p13, %p2488_p7 }
  0x3a   : > { %p2091_p9 = por %p2090_p8, %p2089_p5 }
  0x3b   : > { %p2085_p2 = pneg %p2084_p0 }
  0x3c   : > { %1864 = dma.hbm_to_vmem [thread:$0]  (!%p2478_p6), %s2876_s4, 1024, %s2482_s27, [#allocation9], %s2853_s22, %s2853_s22, %s2855_s26  }
  0x3d   : > { %p2092_p10 = pnand %p2091_p9, %p2085_p2 }
  0x3f   : > { %2095 = shalt.err (!%p2092_p10)
}
  0x40   : > { %s2877_s8 = sld [smem:[#allocation33_spill]]  ;;  %s2351_s27 = smov [#allocation10]  }
  0x41   : > { %s446_s17 = sshll.u32 %s2351_s27, 4  ;;  %s447_s17 = int_to_ptr.vmem [resolvable:$true] %s446_s17 }
  0x42   : > { %s2107_s14 = scalar_lea.vmem %s447_s17, 2048  ;;  %p2115_p0 = scmp.lt.s32.totalorder %s447_s17, %s447_s17 }
  0x43   : > { %p2108_p11 = scmp.ne.s32.totalorder %s447_s17, %s2107_s14  ;;  %p2116_p2 = scmp.lt.s32.totalorder %s2107_s14, %s2107_s14 }
  0x45   : > { %p2110_p12 = pnand %p2108_p11, %p2488_p7  ;;  %p2117_p5 = por %p2116_p2, %p2115_p0 }
  0x46   : > { %1870 = dma.hbm_to_vmem [thread:$0]  (!%p2478_p6), %s2877_s8, 1024, %s2484_s30, [#allocation12], %s2853_s22, %s2853_s22, %s2855_s26  }
  0x47   : > { %p2111_p13 = pneg %p2110_p12 }
  0x49   : > { %p2118_p8 = pnand %p2117_p5, %p2111_p13 }
  0x4b   : > { %2121 = shalt.err (!%p2118_p8)
}
  0x4c   : > { %s2352_s23 = smov 128   ;;  %s2353_s2 = smov 8  }
  0x4d   : > { %s2878_s6 = sld [smem:[#allocation32_spill]]  ;;  %s2354_s29 = smov [#allocation13]  }
  0x4e   : > { %s478_s27 = sshll.u32 %s2354_s29, 4  ;;  %s2355_s22 = smov [#allocation14]   ;;  %s479_s27 = int_to_ptr.vmem [resolvable:$true] %s478_s27 }
  0x4f   : > { %s494_s26 = sshll.u32 %s2355_s22, 4  ;;  %s2133_s4 = scalar_lea.vmem %s479_s27, 1024  ;;  %s495_s26 = int_to_ptr.vmem [resolvable:$true] %s494_s26 }
  0x50   : > { %p2134_p9 = scmp.ne.s32.totalorder %s479_s27, %s2133_s4  ;;  %p2141_p12 = scmp.lt.s32.totalorder %s479_s27, %s479_s27 }
  0x51   : > { %p2142_p13 = scmp.lt.s32.totalorder %s2133_s4, %s2133_s4 }
  0x52   : > { %p2136_p10 = pnand %p2134_p9, %p2488_p7 }
  0x53   : > { %1867 = dma.hbm_to_vmem [thread:$0]  (!%p2478_p6), %s2878_s6, 2048, %s447_s17, [#allocation9], %s2352_s23, %s2352_s23, %s2353_s2  }
  0x54   : > { %p2137_p11 = pneg %p2136_p10  ;;  %p2143_p0 = por %p2142_p13, %p2141_p12 }
  0x56   : > { %p2144_p2 = pnand %p2143_p0, %p2137_p11 }
  0x58   : > { %2147 = shalt.err (!%p2144_p2)
}
  0x59   : > { %s2879_s14 = smov 4   ;;  %s2880_s2 = smov 64  }
  0x5a   : > { %s2881_s10 = sld [smem:[#allocation34_spill]]  ;;  %s2159_s22 = scalar_lea.vmem %s495_s26, 1024 }
  0x5b   : > { %p2160_p5 = scmp.ne.s32.totalorder %s495_s26, %s2159_s22  ;;  %p2167_p10 = scmp.lt.s32.totalorder %s495_s26, %s495_s26 }
  0x5c   : > { %p2168_p4 = scmp.lt.s32.totalorder %s2159_s22, %s2159_s22 }
  0x5d   : > { %p2162_p8 = pnand %p2160_p5, %p2488_p7 }
  0x5e   : > { %p2169_p12 = por %p2168_p4, %p2167_p10 }
  0x5f   : > { %p2163_p9 = pneg %p2162_p8 }
  0x60   : > { %1873 = dma.hbm_to_vmem [thread:$0]  (!%p2478_p6), %s2881_s10, 1024, %s479_s27, [#allocation12], %s2880_s2, %s2880_s2, %s2879_s14  }
  0x61   : > { %p2170_p11 = pnand %p2169_p12, %p2163_p9 }
  0x63   : > { %2173 = shalt.err (!%p2170_p11)
}
  0x64   : > { %s2882_s12 = sld [smem:[#allocation35_spill]]  ;;  %s1588_s28 = sadd.s32 4294967294, %s2344_s21  }
  0x65   : > { %s2561_s16 = sadd.s32 1, %s2344_s21   ;;  %s48_s29 = sadd.s32 1, %s2340_s20 }
  0x66   : > { %s45_s30 = ssub.s32 %s2344_s21, %s2561_s16  ;;  %p55_p7 = scmp.ne.s32.totalorder %s2340_s20, %s2336_s19 }
  0x67   : > { %p46_p4 = scmp.eq.s32.totalorder %s45_s30, 0  ;;  %p56_p13 = scmp.eq.s32.totalorder %s2344_s21, 0 }
  0x68   : > { %p61_p0 = scmp.ne.s32.totalorder %s2336_s19, %s2332_s18  ;;  %p363_p5 = scmp.eq.s32.totalorder %s2464_s24, 1 }
  0x69   : > { %s2572_s27 = scalar_select %p46_p4, %s2340_s20, %s48_s29  }
  0x6a   : > { %1876 = dma.hbm_to_vmem [thread:$0]  (!%p2478_p6), %s2882_s12, 1024, %s495_s26, [#allocation15], %s2880_s2, %s2880_s2, %s2879_s14  }
  0x6b   : > { %2883 = sst [smem:[#allocation28_spill]] %s2572_s27  ;;  %p2574_p2 = por %p56_p13, %p55_p7 }
  0x6c   : > { %p2580_p6 = por %p2857_p1, %p61_p0  ;;  %p369_p8 = scmp.eq.s32.totalorder %s1588_s28, 1 }
  0x6d   : > { %p1897_p9 = scmp.lt.s32.totalorder %s2344_s21, 2  ;;  %s2587_s14 = sand.u32 1, %s2340_s20  }
  0x6e   : > { %s2885_s26 = scalar_select %p2580_p6, 1, 0 }
  0x6f   : > { %p2589_p10 = por %p363_p5, %p55_p7  ;;  %p2593_p12 = por %p369_p8, %p61_p0 }
  0x70   : > { %s1597_s22 = sshll.u32 %s2587_s14, 2  ;;  %s1598_s4 = sshll.u32 %s2344_s21, 6 }
  0x71   : > { %s2886_s2 = scalar_select %p2589_p10, 1, 0 }
  0x72   : > { %s2887_s23 = scalar_select %p2593_p12, 1, 0 }
  0x73   : > { %s2888_s0 = sld [smem:[#allocation29_spill]]  ;;  %s515_s29 = scalar_lea.vmem [#allocation2], %s1597_s22 }
  0x74   : > { %s522_s6 = sshll.u32 %s515_s29, 4  ;;  %p2608_p11 = pnand %p1897_p9, %p2574_p2  ;;  %s2604_s6 = int_to_ptr.vmem [resolvable:$true] %s522_s6 }
  0x75   : > { %s512_s27 = scalar_lea.sflag [#allocation3], %s2587_s14 }
  0x76   : > { %p2176_p7 = pneg %p2608_p11 }
  0x79   : > { %s2602_s28 = scalar_lea.hbm %s2888_s0, %s1598_s4  ;;  %s2179_s17 = scalar_lea.hbm %s2888_s0, 128 }
  0x7a   : > { %s2174_s13 = scalar_lea.hbm %s2602_s28, 64  ;;  %p2180_p2 = scmp.lt.s32.totalorder %s2602_s28, %s2888_s0 }
  0x7b   : > { %p2175_p4 = scmp.ne.s32.totalorder %s2602_s28, %s2174_s13  ;;  %p2181_p5 = scmp.lt.s32.totalorder %s2179_s17, %s2174_s13 }
  0x7d   : > { %p2177_p13 = pnand %p2176_p7, %p2175_p4  ;;  %p2182_p8 = por %p2181_p5, %p2180_p2 }
  0x7f   : > { %p2178_p0 = pneg %p2177_p13 }
  0x81   : > { %p2183_p9 = pnand %p2182_p8, %p2178_p0 }
  0x83   : > { %2186 = shalt.err (!%p2183_p9)
}
  0x84   : > { %s2187_s10 = scalar_lea.vmem %s2604_s6, 64  ;;  %s2356_s22 = smov [#allocation2]  }
  0x85   : > { %p2188_p1 = scmp.ne.s32.totalorder %s2604_s6, %s2187_s10  ;;  %s2192_s4 = sshll.u32 %s2356_s22, 4  ;;  %s2193_s4 = int_to_ptr.vmem [resolvable:$false] %s2192_s4 }
  0x86   : > { %s2194_s12 = scalar_lea.vmem %s2193_s4, 128  ;;  %p2195_p12 = scmp.lt.s32.totalorder %s2604_s6, %s2193_s4 }
  0x87   : > { %p2190_p4 = pnand %p2188_p1, %p2176_p7  ;;  %p2196_p10 = scmp.lt.s32.totalorder %s2194_s12, %s2187_s10 }
  0x89   : > { %p2191_p13 = pneg %p2190_p4  ;;  %p2197_p6 = por %p2196_p10, %p2195_p12 }
  0x8b   : > { %p2198_p2 = pnand %p2197_p6, %p2191_p13 }
  0x8d   : > { %2201 = shalt.err (!%p2198_p2)
}
  0x8e   : > { %1880 = dma.hbm_to_vmem [thread:$0]  (!%p2608_p11), %s2602_s28, 64, %s2604_s6, %s512_s27  }
  0x8f   : > { %s1600_s13 = sshll.u32 %s2344_s21, 7  ;;  %s2890_s22 = sshll.u32 %s2587_s14, 3 }
  0x90   : > { %s2643_s29 = scalar_lea.hbm %s2837_s1, %s1600_s13  ;;  %s533_s10 = scalar_lea.vmem [#allocation5], %s2890_s22 }
  0x91   : > { %s540_s12 = sshll.u32 %s533_s10, 4  ;;  %s2891_s4 = sand.u32 1, %s2344_s21   ;;  %s541_s12 = int_to_ptr.vmem [resolvable:$true] %s540_s12 }
  0x92   : > { %s530_s0 = scalar_lea.sflag [#allocation6], %s2891_s4  ;;  %s2202_s20 = scalar_lea.hbm %s2643_s29, 128 }
  0x93   : > { %p2203_p1 = scmp.ne.s32.totalorder %s2643_s29, %s2202_s20  ;;  %s2207_s28 = scalar_lea.hbm %s2837_s1, 256 }
  0x94   : > { %p2208_p12 = scmp.lt.s32.totalorder %s2643_s29, %s2837_s1  ;;  %p2209_p0 = scmp.lt.s32.totalorder %s2207_s28, %s2202_s20 }
  0x95   : > { %p2205_p6 = pnand %p2203_p1, %p2176_p7 }
  0x96   : > { %p2210_p5 = por %p2209_p0, %p2208_p12 }
  0x97   : > { %p2206_p10 = pneg %p2205_p6 }
  0x99   : > { %p2211_p8 = pnand %p2210_p5, %p2206_p10 }
  0x9b   : > { %2214 = shalt.err (!%p2211_p8)
}
  0x9c   : > { %s2215_s17 = scalar_lea.vmem %s541_s12, 128  ;;  %s2357_s30 = smov [#allocation5]  }
  0x9d   : > { %p2216_p9 = scmp.ne.s32.totalorder %s541_s12, %s2215_s17  ;;  %s2220_s22 = sshll.u32 %s2357_s30, 4  ;;  %s2221_s22 = int_to_ptr.vmem [resolvable:$false] %s2220_s22 }
  0x9e   : > { %s2222_s10 = scalar_lea.vmem %s2221_s22, 256  ;;  %p2223_p2 = scmp.lt.s32.totalorder %s541_s12, %s2221_s22 }
  0x9f   : > { %p2218_p4 = pnand %p2216_p9, %p2176_p7  ;;  %p2224_p1 = scmp.lt.s32.totalorder %s2222_s10, %s2215_s17 }
  0xa1   : > { %p2219_p13 = pneg %p2218_p4  ;;  %p2225_p6 = por %p2224_p1, %p2223_p2 }
  0xa3   : > { %p2226_p3 = pnand %p2225_p6, %p2219_p13 }
  0xa5   : > { %2229 = shalt.err (!%p2226_p3)
}
  0xa6   : > { %1883 = dma.hbm_to_vmem [thread:$0]  (!%p2608_p11), %s2643_s29, 128, %s541_s12, %s530_s0  }
  0xa7   : > { %p2892_p10 = scmp.ne.s32.totalorder %s2872_s25, 0 }
  0xa8   : > { %s2670_s20 = sand.u32 (!%p2892_p10), 1, %s2336_s19   ;;  %p2893_p7 = scmp.ne.s32.totalorder (!%p2892_p10), %s2885_s26, 0 }
  0xa9   : > { %549 = sbr.rel (%p2892_p10) target bundleno = 1470 (0x5be), region = 76  ;;  %s1602_s4 = sshll.u32 (!%p2892_p10), %s2670_s20, 2 }
  0xaa   : > { %s552_s6 = scalar_lea.sflag (!%p2892_p10), [#allocation3], %s2670_s20  ;;  %s2674_s27 = scalar_lea.vmem (!%p2892_p10), [#allocation2], %s1602_s4 }
  0xae   : > { %2299 = dma.done.wait (%p2893_p7), %s552_s6, 64  }
  0xaf   : > { %2301 = vsyncadd (%p2893_p7), %s552_s6, 4294967232  ;;  %s560_s0 = sand.u32 1, %s2464_s24   ;;  %s1603_s8 = sshll.u32 %s2670_s20, 3 }
  0xb0   : > { %s561_s25 = scalar_lea.sflag [#allocation6], %s560_s0  ;;  %s2684_s29 = scalar_lea.vmem [#allocation5], %s1603_s8 }
  0xb1   : > { %2303 = dma.done.wait (%p2893_p7), %s561_s25, 128  }
  0xb2   : > { %2305 = vsyncadd (%p2893_p7), %s561_s25, 4294967168  ;;  %p2894_p3 = scmp.eq.s32.totalorder %s2464_s24, 0 }
  0xb4   : > { %2307 = dma.done.wait (%p2894_p3), [#allocation6], 1024   ;;  %p2895_p11 = pmov %p2894_p3 }
  0xb5   : > { %p2896_p12 = pmov %p2894_p3 }
  0xb6   : > { %2309 = vsyncadd (%p2895_p11), [#allocation6], 4294966272 }
  0xb7   : > { %2311 = dma.done.wait (%p2896_p12), [#allocation9], 3072   ;;  %p2897_p0 = pmov %p2894_p3 }
  0xb9   : > { %2313 = vsyncadd (%p2897_p0), [#allocation9], 4294964224  ;;  %p2898_p5 = pmov %p2897_p0 }
  0xba   : > { %p2899_p8 = pmov %p2897_p0 }
  0xbb   : > { %2315 = dma.done.wait (%p2898_p5), [#allocation12], 2048  }
  0xbc   : > { %2317 = vsyncadd (%p2899_p8), [#allocation12], 4294965248  ;;  %p2900_p9 = pmov %p2897_p0 }
  0xbd   : > { %p2901_p4 = pmov %p2897_p0 }
  0xbe   : > { %2319 = dma.done.wait (%p2900_p9), [#allocation15], 1024  }
  0xbf   : > { %2321 = vsyncadd (%p2901_p4), [#allocation15], 4294966272  ;;  %v2358_v0 = vmov 0.0   ;;  %vm2359_vm0 = vmmov 0   ;;  %v1950_v1 = vld [vmem:[#allocation7 + $0x38] sm:$0xff]   ;;  %v1951_v2 = vld [vmem:[#allocation7 + $0x30] sm:$0xff]  }
  0xc0   : > { %1726 = vmatprep.subr.bf16.mxu0 %v2358_v0  ;;  %1742 = vmatprep.mubr.msk.bf16.mxu0 %vm2359_vm0, %v2358_v0  ;;  %v1952_v3 = vld [vmem:[#allocation7 + $0x28] sm:$0xff]   ;;  %v1958_v4 = vld [vmem:[#allocation8 + $0x38] sm:$0xff]   ;;  %v1953_v5 = vld [vmem:[#allocation7 + $0x20] sm:$0xff]   ;;  %v2360_v42 = vmov 0   ;;  %s1611_s30 = sshll.u32 %s2670_s20, 4  ;;  %s1680_s0 = sshll.u32 %s2464_s24, 8 }
  0xc1   : > { %1746 = vmatprep.subr.bf16.mxu1 %v2358_v0  ;;  %1762 = vmatprep.mubr.msk.bf16.mxu1 %vm2359_vm0, %v2358_v0  ;;  %v1959_v6 = vld [vmem:[#allocation8 + $0x30] sm:$0xff]   ;;  %v1954_v7 = vld [vmem:[#allocation7 + $0x18] sm:$0xff]   ;;  %v1960_v8 = vld [vmem:[#allocation8 + $0x28] sm:$0xff]   ;;  %s2757_s22 = scalar_lea.vmem [#allocation17], %s1611_s30  ;;  %s1404_s12 = scalar_lea.hbm %s2851_s15, %s1680_s0 }
  0xc2   : > { %1727 = vmatpush3.bf16.msra.mxu0 %v1950_v1  ;;  %1747 = vmatpush3.bf16.msra.mxu1 %v1958_v4  ;;  %v1955_v9 = vld [vmem:[#allocation7 + $0x10] sm:$0xff]   ;;  %v1961_v10 = vld [vmem:[#allocation8 + $0x20] sm:$0xff]   ;;  %v1956_v11 = vld [vmem:[#allocation7 + $0x8] sm:$0xff]   ;;  %s1406_s25 = sshll.u32 %s2757_s22, 4  ;;  %s1379_s28 = scalar_lea.sflag [#allocation18], %s2670_s20  ;;  %s1407_s25 = int_to_ptr.vmem [resolvable:$true] %s1406_s25 }
  0xc3   : > { %1728 = vmatprep.subr.bf16.mxu0 %v2358_v0  ;;  %1748 = vmatprep.subr.bf16.mxu1 %v2358_v0  ;;  %v1962_v12 = vld [vmem:[#allocation8 + $0x18] sm:$0xff]   ;;  %v1957_v13 = vld [vmem:[#allocation7] sm:$0xff]   ;;  %v1963_v14 = vld [vmem:[#allocation8 + $0x10] sm:$0xff]   ;;  %s2230_s13 = scalar_lea.vmem %s1407_s25, 256  ;;  %p2902_p2 = scmp.ne.s32.totalorder %s2886_s2, 0 }
  0xc4   : > { %v646_v15 = vld [vmem:[%s2674_s27] sm:$0xf]  ;;  %v1965_v17 = vld [vmem:[#allocation8] sm:$0xff]   ;;  %v1966_v18 = vld [vmem:[#allocation10 + $0x70] ss:$8 sps:$4 sm:$0xff]   ;;  %p2231_p13 = scmp.ne.s32.totalorder %s1407_s25, %s2230_s13  ;;  %s2361_s14 = smov [#allocation17]  }
  0xc5   : > { %v1964_v16 = vld [vmem:[#allocation8 + $0x8] sm:$0xff]   ;;  %v1968_v19 = vld [vmem:[#allocation10 + $0x74] ss:$8 sps:$4 sm:$0xff]   ;;  %v1972_v23 = vld [vmem:[#allocation10 + $0x50] ss:$8 sps:$4 sm:$0xff]   ;;  %s2234_s17 = sshll.u32 %s2361_s14, 4  ;;  %s2235_s17 = int_to_ptr.vmem [resolvable:$false] %s2234_s17 }
  0xc6   : > { %1729 = vmatpush3.bf16.msra.mxu0 %v1951_v2  ;;  %1749 = vmatpush3.bf16.msra.mxu1 %v1959_v6  ;;  %v1971_v20 = vld [vmem:[#allocation10 + $0x64] ss:$8 sps:$4 sm:$0xff]   ;;  %v1969_v21 = vld [vmem:[#allocation10 + $0x60] ss:$8 sps:$4 sm:$0xff]   ;;  %v1974_v22 = vld [vmem:[#allocation10 + $0x54] ss:$8 sps:$4 sm:$0xff]   ;;  %v891_v2 = vlaneseq  ;;  %p2232_p1 = pnand %p2231_p13, %p2902_p2  ;;  %p2237_p10 = scmp.lt.s32.totalorder %s1407_s25, %s2235_s17 }
  0xc7   : > { %1730 = vmatprep.subr.bf16.mxu0 %v2358_v0  ;;  %1750 = vmatprep.subr.bf16.mxu1 %v2358_v0  ;;  %v1977_v24 = vld [vmem:[#allocation10 + $0x44] ss:$8 sps:$4 sm:$0xff]   ;;  %v1975_v25 = vld [vmem:[#allocation10 + $0x40] ss:$8 sps:$4 sm:$0xff]   ;;  %v1980_v26 = vld [vmem:[#allocation10 + $0x34] ss:$8 sps:$4 sm:$0xff]  }
  0xc8   : > { %v1978_v27 = vld [vmem:[#allocation10 + $0x30] ss:$8 sps:$4 sm:$0xff]   ;;  %v1983_v28 = vld [vmem:[#allocation10 + $0x24] ss:$8 sps:$4 sm:$0xff]   ;;  %v1981_v29 = vld [vmem:[#allocation10 + $0x20] ss:$8 sps:$4 sm:$0xff]   ;;  %p2233_p6 = pneg %p2232_p1 }
  0xc9   : > { %v1986_v30 = vld [vmem:[#allocation10 + $0x14] ss:$8 sps:$4 sm:$0xff]   ;;  %v1984_v31 = vld [vmem:[#allocation10 + $0x10] ss:$8 sps:$4 sm:$0xff]   ;;  %v1612_v32 = vld [vmem:[%s2839_s3] ss:$0 sm:$0xff] }
  0xca   : > { %1731 = vmatpush3.bf16.msra.mxu0 %v1952_v3  ;;  %1751 = vmatpush3.bf16.msra.mxu1 %v1960_v8  ;;  %v1989_v40 = vld [vmem:[#allocation10 + $0x4] ss:$8 sps:$4 sm:$0xff]   ;;  %v1987_v41 = vld [vmem:[#allocation10] ss:$8 sps:$4 sm:$0xff]   ;;  %v1990_v43 = vld [vmem:[#allocation11 + $0x38] sm:$0xff]   ;;  %v892_v3 = vshrl.u32 %v891_v2, 7 }
  0xcb   : > { %1732 = vmatprep.subr.bf16.mxu0 %v2358_v0  ;;  %1752 = vmatprep.subr.bf16.mxu1 %v2358_v0  ;;  %v1621_v44 = vld [vmem:[%s2841_s5] ss:$0 sm:$0xff]  ;;  %v1991_v52 = vld [vmem:[#allocation11 + $0x30] sm:$0xff]   ;;  %v1993_v54 = vld [vmem:[#allocation11 + $0x20] sm:$0xff]   ;;  %s2236_s30 = scalar_lea.vmem %s2235_s17, 512 }
  0xcc   : > { %v1992_v53 = vld [vmem:[#allocation11 + $0x28] sm:$0xff]   ;;  %v1994_v55 = vld [vmem:[#allocation11 + $0x18] sm:$0xff]   ;;  %v1995_v56 = vld [vmem:[#allocation11 + $0x10] sm:$0xff]   ;;  %v893_v4 = vsub.s32 0, %v892_v3  ;;  %v897_v6 = vsub.s32 1, %v892_v3  ;;  %p2238_p7 = scmp.lt.s32.totalorder %s2236_s30, %s2230_s13 }
  0xcd   : > { %v1996_v57 = vld [vmem:[#allocation11 + $0x8] sm:$0xff]   ;;  %v1997_v58 = vld [vmem:[#allocation11] sm:$0xff]   ;;  %v1998_v59 = vld [vmem:[#allocation13 + $0x38] sm:$0xff]  }
  0xce   : > { %1733 = vmatpush3.bf16.msra.mxu0 %v1953_v5  ;;  %1753 = vmatpush3.bf16.msra.mxu1 %v1961_v10  ;;  %v1999_v60 = vld [vmem:[#allocation13 + $0x30] sm:$0xff]   ;;  %v2000_v61 = vld [vmem:[#allocation13 + $0x28] sm:$0xff]   ;;  %v2001_v62 = vld [vmem:[#allocation13 + $0x20] sm:$0xff]   ;;  %p2239_p3 = por %p2238_p7, %p2237_p10 }
  0xcf   : > { %1734 = vmatprep.subr.bf16.mxu0 %v2358_v0  ;;  %1754 = vmatprep.subr.bf16.mxu1 %v2358_v0  ;;  %v2002_v63 = vld [vmem:[#allocation13 + $0x18] sm:$0xff]   ;;  %v2003_v1 = vld [vmem:[#allocation13 + $0x10] sm:$0xff]   ;;  %v889_v5 = vld [vmem:[%s2843_s7] sm:$0x3] }
  0xd0   : > { %v898_v8 = vrot.slane %v889_v5, %v897_v6  ;;  %p2240_p11 = pnand %p2239_p3, %p2233_p6 }
  0xd2   : > { %1735 = vmatpush3.bf16.msra.mxu0 %v1954_v7  ;;  %1755 = vmatpush3.bf16.msra.mxu1 %v1962_v12  ;;  %v894_v7 = vrot.slane %v889_v5, %v893_v4 }
  0xd3   : > { %1736 = vmatprep.subr.bf16.mxu0 %v2358_v0  ;;  %1756 = vmatprep.subr.bf16.mxu1 %v2358_v0 }
  0xd6   : > { %1737 = vmatpush3.bf16.msra.mxu0 %v1955_v9  ;;  %1757 = vmatpush3.bf16.msra.mxu1 %v1963_v14 }
  0xd7   : > { %1738 = vmatprep.subr.bf16.mxu0 %v2358_v0  ;;  %1758 = vmatprep.subr.bf16.mxu1 %v2358_v0 }
  0xda   : > { %1739 = vmatpush3.bf16.msra.mxu0 %v1956_v11  ;;  %1759 = vmatpush3.bf16.msra.mxu1 %v1964_v16 }
  0xdb   : > { %1740 = vmatprep.subr.bf16.mxu0 %v2358_v0  ;;  %1760 = vmatprep.subr.bf16.mxu1 %v2358_v0 }
  0xde   : > { %1741 = vmatpush3.bf16.msra.mxu0 %v1957_v13  ;;  %1761 = vmatpush3.bf16.msra.mxu1 %v1965_v17  ;;  %v1022_v17 = vld [vmem:[%s2684_s29] sm:$0xff] }
  0xdf   : > { %1766 = vmatprep.subr.bf16.mxu1 %v2358_v0  ;;  %981 = vmatprep.subr.bf16.mxu0 %v1968_v19 }
  0xe1   : > { %1743 = vmatmul.mubr.bf16.vlgmr.msra.gmra.mxu0 %v646_v15 }
  0xe2   : > { %982 = vmatpush1.bf16.msra.mxu0 %v1966_v18  ;;  %1013 = vmatprep.mubr.bf16.mxu0 %v2360_v42 }
  0xe3   : > { %983 = vmatprep.subr.bf16.mxu0 %v1971_v20 }
  0xe6   : > { %984 = vmatpush1.bf16.msra.mxu0 %v1969_v21 }
  0xe7   : > { %985 = vmatprep.subr.bf16.mxu0 %v1974_v22  ;;  %v2004_v22 = vld [vmem:[#allocation13 + $0x8] sm:$0xff]  }
  0xea   : > { %986 = vmatpush1.bf16.msra.mxu0 %v1972_v23  ;;  %v2005_v23 = vld [vmem:[#allocation13] sm:$0xff]  }
  0xeb   : > { %987 = vmatprep.subr.bf16.mxu0 %v1977_v24  ;;  %v2006_v24 = vld [vmem:[#allocation14 + $0x38] sm:$0xff]  }
  0xee   : > { %988 = vmatpush1.bf16.msra.mxu0 %v1975_v25  ;;  %v2007_v25 = vld [vmem:[#allocation14 + $0x30] sm:$0xff]  }
  0xef   : > { %989 = vmatprep.subr.bf16.mxu0 %v1980_v26  ;;  %v2008_v26 = vld [vmem:[#allocation14 + $0x28] sm:$0xff]  }
  0xf2   : > { %990 = vmatpush1.bf16.msra.mxu0 %v1978_v27  ;;  %v2009_v27 = vld [vmem:[#allocation14 + $0x20] sm:$0xff]  }
  0xf3   : > { %991 = vmatprep.subr.bf16.mxu0 %v1983_v28  ;;  %v2010_v28 = vld [vmem:[#allocation14 + $0x18] sm:$0xff]  }
  0xf6   : > { %992 = vmatpush1.bf16.msra.mxu0 %v1981_v29  ;;  %v2011_v29 = vld [vmem:[#allocation14 + $0x10] sm:$0xff]  }
  0xf7   : > { %993 = vmatprep.subr.bf16.mxu0 %v1986_v30  ;;  %v1646_v30 = vld [vmem:[%s2845_s9] ss:$0 sm:$0xff] }
  0xfa   : > { %994 = vmatpush1.bf16.msra.mxu0 %v1984_v31 }
  0xfb   : > { %995 = vmatprep.subr.bf16.mxu0 %v1989_v40  ;;  %v1655_v40 = vld [vmem:[%s2847_s11] ss:$0 sm:$0xff] }
  0xfe   : > { %996 = vmatpush1.bf16.msra.mxu0 %v1987_v41 }
  0xff   : > { %1786 = vmatprep.subr.bf16.mxu0 %v2358_v0 }
 0x1a1   : > { %v752_v33 = vpop.f32.mrf.mxu0 }
 0x1a2   : > { %v753_v34 = vadd.f32 %v1612_v32, %v752_v33 }
 0x1a3   : > { %v1744_v35 = vpop.f32.mrf.mxu0 }
 0x1a4   : > { %v758_v36 = vmax.f32 %v753_v34, 0.0 }
 0x1a5   : > { %v755_v37 = vpop.f32.mrf.mxu0 }
 0x1a6   : > { %v759_v38 = vpack.c.bf16 %v758_v36, %v758_v36 }
 0x1a7   : > { %v1745_v39 = vpop.f32.mrf.mxu0 }
 0x1a8   : > { %1763 = vmatmul.mubr.bf16.vlgmr.msra.gmra.mxu1 %v759_v38  ;;  %v2012_v38 = vld [vmem:[#allocation14 + $0x8] sm:$0xff]   ;;  %v2013_v39 = vld [vmem:[#allocation14] sm:$0xff]  }
 0x1a9   : > { %1782 = vmatprep.mubr.msk.bf16.mxu1 %vm2359_vm0, %v2358_v0  ;;  %1767 = vmatpush3.bf16.msra.mxu1 %v1990_v43 }
 0x1aa   : > { %1768 = vmatprep.subr.bf16.mxu1 %v2358_v0 }
 0x1ad   : > { %1769 = vmatpush3.bf16.msra.mxu1 %v1991_v52 }
 0x1ae   : > { %1770 = vmatprep.subr.bf16.mxu1 %v2358_v0 }
 0x1b1   : > { %1771 = vmatpush3.bf16.msra.mxu1 %v1992_v53 }
 0x1b2   : > { %1772 = vmatprep.subr.bf16.mxu1 %v2358_v0 }
 0x1b5   : > { %1773 = vmatpush3.bf16.msra.mxu1 %v1993_v54 }
 0x1b6   : > { %1774 = vmatprep.subr.bf16.mxu1 %v2358_v0 }
 0x1b9   : > { %1775 = vmatpush3.bf16.msra.mxu1 %v1994_v55 }
 0x1ba   : > { %1776 = vmatprep.subr.bf16.mxu1 %v2358_v0 }
 0x1bd   : > { %1777 = vmatpush3.bf16.msra.mxu1 %v1995_v56 }
 0x1be   : > { %1778 = vmatprep.subr.bf16.mxu1 %v2358_v0 }
 0x1c1   : > { %1779 = vmatpush3.bf16.msra.mxu1 %v1996_v57 }
 0x1c2   : > { %1780 = vmatprep.subr.bf16.mxu1 %v2358_v0 }
 0x1c5   : > { %1781 = vmatpush3.bf16.msra.mxu1 %v1997_v58 }
 0x1c6   : > { %1806 = vmatprep.subr.bf16.mxu1 %v2358_v0 }
 0x268   : > { %v865_v45 = vpop.f32.mrf.mxu1 }
 0x269   : > { %v866_v46 = vadd.f32 %v1621_v44, %v865_v45 }
 0x26a   : > { %v1764_v47 = vpop.f32.mrf.mxu1 }
 0x26b   : > { %v871_v48 = vmax.f32 %v866_v46, 0.0 }
 0x26c   : > { %v868_v49 = vpop.f32.mrf.mxu1 }
 0x26d   : > { %v872_v50 = vpack.c.bf16 %v871_v48, %v871_v48 }
 0x26e   : > { %v1765_v51 = vpop.f32.mrf.mxu1 }
 0x26f   : > { %1014 = vmatmul.mubr.bf16.vlgmr.msra.gmra.mxu0 %v872_v50 }
 0x270   : > { %1802 = vmatprep.mubr.msk.bf16.mxu0 %vm2359_vm0, %v2358_v0  ;;  %1787 = vmatpush3.bf16.msra.mxu0 %v1998_v59 }
 0x271   : > { %1788 = vmatprep.subr.bf16.mxu0 %v2358_v0 }
 0x274   : > { %1789 = vmatpush3.bf16.msra.mxu0 %v1999_v60 }
 0x275   : > { %1790 = vmatprep.subr.bf16.mxu0 %v2358_v0 }
 0x278   : > { %1791 = vmatpush3.bf16.msra.mxu0 %v2000_v61 }
 0x279   : > { %1792 = vmatprep.subr.bf16.mxu0 %v2358_v0 }
 0x27c   : > { %1793 = vmatpush3.bf16.msra.mxu0 %v2001_v62 }
 0x27d   : > { %1794 = vmatprep.subr.bf16.mxu0 %v2358_v0 }
 0x280   : > { %1795 = vmatpush3.bf16.msra.mxu0 %v2002_v63 }
 0x281   : > { %1796 = vmatprep.subr.bf16.mxu0 %v2358_v0 }
 0x284   : > { %1797 = vmatpush3.bf16.msra.mxu0 %v2003_v1 }
 0x285   : > { %1798 = vmatprep.subr.bf16.mxu0 %v2358_v0 }
 0x288   : > { %1799 = vmatpush3.bf16.msra.mxu0 %v2004_v22 }
 0x289   : > { %1800 = vmatprep.subr.bf16.mxu0 %v2358_v0 }
 0x28c   : > { %1801 = vmatpush3.bf16.msra.mxu0 %v2005_v23 }
 0x32f   : > { %v1015_v9 = vpop.f32.mrf.mxu0 }
 0x330   : > { %v1016_v10 = vadd.f32 %v1015_v9, %v894_v7 }
 0x331   : > { %v1017_v11 = vpop.f32.mrf.mxu0 }
 0x332   : > { %1371 = vst [vmem:[%s2757_s22] sm:$0xff] %v1016_v10  ;;  %v1018_v12 = vadd.f32 %v1017_v11, %v898_v8 }
 0x333   : > { %v1019_v13 = vpop.f32.mrf.mxu0 }
 0x334   : > { %v1023_v14 = vmul.f32 0.5, %v1018_v12  ;;  %1372 = vst [vmem:[%s2757_s22 + $0x8] sm:$0xff] %v1018_v12 }
 0x335   : > { %v1020_v15 = vpop.f32.mrf.mxu0 }
 0x336   : > { %v1024_v16 = vmul.f32 1.442695, %v1023_v14 }
 0x338   : > { %2014 = vpow2.f32 %v1024_v16 }
 0x345   : > { %v2015_v18 = vpop.eup %2014 }
 0x346   : > { %v1026_v19 = vmul.f32 %v2015_v18, %v1022_v17 }
 0x348   : > { %v1027_v20 = vadd.f32 %v1026_v19, %v1016_v10 }
 0x34a   : > { %v1028_v21 = vpack.c.bf16 %v1027_v20, %v1027_v20 }
 0x34c   : > { %1783 = vmatmul.mubr.bf16.vlgmr.msra.gmra.mxu1 %v1028_v21 }
 0x34d   : > { %1822 = vmatprep.mubr.msk.bf16.mxu1 %vm2359_vm0, %v2358_v0  ;;  %1807 = vmatpush3.bf16.msra.mxu1 %v2006_v24 }
 0x34e   : > { %1808 = vmatprep.subr.bf16.mxu1 %v2358_v0 }
 0x351   : > { %1809 = vmatpush3.bf16.msra.mxu1 %v2007_v25 }
 0x352   : > { %1810 = vmatprep.subr.bf16.mxu1 %v2358_v0 }
 0x355   : > { %1811 = vmatpush3.bf16.msra.mxu1 %v2008_v26 }
 0x356   : > { %1812 = vmatprep.subr.bf16.mxu1 %v2358_v0 }
 0x359   : > { %1813 = vmatpush3.bf16.msra.mxu1 %v2009_v27 }
 0x35a   : > { %1814 = vmatprep.subr.bf16.mxu1 %v2358_v0 }
 0x35d   : > { %1815 = vmatpush3.bf16.msra.mxu1 %v2010_v28 }
 0x35e   : > { %1816 = vmatprep.subr.bf16.mxu1 %v2358_v0 }
 0x361   : > { %1817 = vmatpush3.bf16.msra.mxu1 %v2011_v29 }
 0x362   : > { %1818 = vmatprep.subr.bf16.mxu1 %v2358_v0 }
 0x365   : > { %1819 = vmatpush3.bf16.msra.mxu1 %v2012_v38 }
 0x366   : > { %1820 = vmatprep.subr.bf16.mxu1 %v2358_v0 }
 0x369   : > { %1821 = vmatpush3.bf16.msra.mxu1 %v2013_v39 }
 0x40c   : > { %v1134_v31 = vpop.f32.mrf.mxu1 }
 0x40d   : > { %v1135_v32 = vadd.f32 %v1646_v30, %v1134_v31 }
 0x40e   : > { %v1784_v33 = vpop.f32.mrf.mxu1 }
 0x40f   : > { %v1140_v34 = vmax.f32 %v1135_v32, 0.0 }
 0x410   : > { %v1137_v35 = vpop.f32.mrf.mxu1 }
 0x411   : > { %v1141_v36 = vpack.c.bf16 %v1140_v34, %v1140_v34 }
 0x412   : > { %v1785_v37 = vpop.f32.mrf.mxu1 }
 0x413   : > { %1803 = vmatmul.mubr.bf16.vlgmr.msra.gmra.mxu0 %v1141_v36 }
 0x4d3   : > { %v1247_v41 = vpop.f32.mrf.mxu0 }
 0x4d4   : > { %v1248_v42 = vadd.f32 %v1655_v40, %v1247_v41 }
 0x4d5   : > { %v1804_v43 = vpop.f32.mrf.mxu0 }
 0x4d6   : > { %v1253_v44 = vmax.f32 %v1248_v42, 0.0 }
 0x4d7   : > { %v1250_v45 = vpop.f32.mrf.mxu0 }
 0x4d8   : > { %v1254_v46 = vpack.c.bf16 %v1253_v44, %v1253_v44 }
 0x4d9   : > { %v1805_v47 = vpop.f32.mrf.mxu0 }
 0x4da   : > { %1823 = vmatmul.mubr.bf16.vlgmr.msra.gmra.mxu1 %v1254_v46 }
 0x4db   : > { %2243 = shalt.err (!%p2240_p11)
}
 0x4dc   : > { %s2244_s22 = scalar_lea.hbm %s1404_s12, 256  ;;  %s2248_s6 = scalar_lea.hbm %s2851_s15, 512 }
 0x4dd   : > { %p2245_p12 = scmp.ne.s32.totalorder %s1404_s12, %s2244_s22  ;;  %p2249_p8 = scmp.lt.s32.totalorder %s1404_s12, %s2851_s15 }
 0x4de   : > { %p2250_p9 = scmp.lt.s32.totalorder %s2248_s6, %s2244_s22 }
 0x4df   : > { %p2246_p0 = pnand %p2245_p12, %p2902_p2 }
 0x4e0   : > { %p2251_p4 = por %p2250_p9, %p2249_p8 }
 0x4e1   : > { %p2247_p5 = pneg %p2246_p0 }
 0x4e3   : > { %p2252_p13 = pnand %p2251_p4, %p2247_p5 }
 0x4e5   : > { %2255 = shalt.err (!%p2252_p13)
}
 0x4e6   : > { %1855 = dma.vmem_to_hbm [thread:$0]  (%p2902_p2), %s1407_s25, 256, %s1404_s12, %s1379_s28  }
 0x4e7   : > { %s2903_s13 = sld [smem:[#allocation36_spill]]  ;;  %s1675_s14 = sshll.u32 %s2464_s24, 7 }
 0x4e8   : > { %s637_s17 = scalar_lea.vmem [#allocation16], %s1603_s8  ;;  %s2904_s28 = sld [smem:[#allocation37_spill]] }
 0x4e9   : > { %s1392_s30 = sshll.u32 %s637_s17, 4  ;;  %s1374_s10 = scalar_lea.sflag [#allocation4], %s2670_s20  ;;  %s1393_s30 = int_to_ptr.vmem [resolvable:$true] %s1392_s30 }
 0x4ea   : > { %s2256_s4 = scalar_lea.vmem %s1393_s30, 128  ;;  %s2362_s6 = smov [#allocation16]  }
 0x4eb   : > { %p2257_p1 = scmp.ne.s32.totalorder %s1393_s30, %s2256_s4  ;;  %s2260_s27 = sshll.u32 %s2362_s6, 4  ;;  %s2261_s27 = int_to_ptr.vmem [resolvable:$false] %s2260_s27 }
 0x4ec   : > { %s2262_s24 = scalar_lea.vmem %s2261_s27, 256  ;;  %p2263_p7 = scmp.lt.s32.totalorder %s1393_s30, %s2261_s27 }
 0x4ed   : > { %v1664_v0 = vld [vmem:[%s2903_s13] ss:$0 sm:$0xff]  ;;  %p2258_p6 = pnand %p2257_p1, %p2902_p2  ;;  %p2264_p3 = scmp.lt.s32.totalorder %s2262_s24, %s2256_s4 }
 0x4ee   : > { %s1390_s22 = scalar_lea.hbm %s2904_s28, %s1675_s14 }
 0x4ef   : > { %p2259_p10 = pneg %p2258_p6  ;;  %p2265_p11 = por %p2264_p3, %p2263_p7 }
 0x4f1   : > { %p2266_p12 = pnand %p2265_p11, %p2259_p10 }
 0x59a   : > { %v1360_v48 = vpop.f32.mrf.mxu1 }
 0x59b   : > { %v1361_v49 = vadd.f32 %v1664_v0, %v1360_v48 }
 0x59c   : > { %v1824_v50 = vpop.f32.mrf.mxu1 }
 0x59d   : > { %v1366_v51 = vmul.f32 0.5, %v1361_v49 }
 0x59e   : > { %v1363_v52 = vpop.f32.mrf.mxu1 }
 0x59f   : > { %2016 = vtanh.f32 %v1366_v51 }
 0x5a0   : > { %v1825_v53 = vpop.f32.mrf.mxu1 }
 0x5ac   : > { %v2017_v54 = vpop.eup %2016 }
 0x5ad   : > { %v1368_v55 = vmul.f32 0.5, %v2017_v54 }
 0x5af   : > { %v1369_v56 = vadd.f32 0.5, %v1368_v55 }
 0x5b1   : > { %1370 = vst [vmem:[%s637_s17] sm:$0xff] %v1369_v56 }
 0x5b2   : > { %2269 = shalt.err (!%p2266_p12)
}
 0x5b3   : > { %s2270_s8 = scalar_lea.hbm %s1390_s22, 128  ;;  %s2274_s29 = scalar_lea.hbm %s2904_s28, 256 }
 0x5b4   : > { %p2271_p0 = scmp.ne.s32.totalorder %s1390_s22, %s2270_s8  ;;  %p2275_p9 = scmp.lt.s32.totalorder %s1390_s22, %s2904_s28 }
 0x5b5   : > { %p2276_p4 = scmp.lt.s32.totalorder %s2274_s29, %s2270_s8 }
 0x5b6   : > { %p2272_p5 = pnand %p2271_p0, %p2902_p2 }
 0x5b7   : > { %p2277_p13 = por %p2276_p4, %p2275_p9 }
 0x5b8   : > { %p2273_p8 = pneg %p2272_p5 }
 0x5ba   : > { %p2278_p1 = pnand %p2277_p13, %p2273_p8 }
 0x5bc   : > { %2281 = shalt.err (!%p2278_p1)
}
 0x5bd   : > { %1854 = dma.vmem_to_hbm [thread:$0]  (%p2902_p2), %s1393_s30, 128, %s1390_s22, %s1374_s10  }
 0x5be PF: > { %s1418_s14 = sand.u32 1, %s2332_s18   ;;  %p2905_p6 = scmp.ne.s32.totalorder %s2887_s23, 0 }
 0x5bf   : > { %p2906_p10 = scmp.ge.s32.totalorder %s2344_s21, 2  ;;  %s1419_s17 = scalar_lea.sflag [#allocation4], %s1418_s14 }
 0x5c1   : > { %p1885_p7 = pnand %p2906_p10, %p2905_p6 }
 0x5c3   : > { %p1886_p3 = pneg %p1885_p7 }
 0x5c5   : > { %2323 = dma.done.wait (%p1886_p3), %s1419_s17, 128  }
 0x5c6   : > { %2325 = vsyncadd (%p1886_p3), %s1419_s17, 4294967168  ;;  %s1428_s25 = scalar_lea.sflag [#allocation18], %s1418_s14 }
 0x5c7   : > { %2327 = dma.done.wait (%p1886_p3), %s1428_s25, 256  }
 0x5c8   : > { %2329 = vsyncadd (%p1886_p3), %s1428_s25, 4294967040  ;;  %s2907_s12 = sld [smem:[#allocation27_spill]]  ;;  %p38_p2 = scmp.ge.s32.totalorder %s2561_s16, 4  }
 0x5c9   : > { %s2908_s20 = sld [smem:[#allocation28_spill]]  ;;  %s2909_s18 = smov %s2336_s19 }
 0x5ca   : > { %s2911_s21 = smov %s2561_s16  ;;  %40 = sbr.rel (!%p38_p2) target bundleno = 22 (0x16), region = 175 }
 0x5ce   : > { %s2910_s19 = smov %s2907_s12 }
 0x5cf   :  { %1433 = vsyncpa [#allocation3], 1 }
 0x5d0   :  { %1435 = vsyncpa [#allocation3 + $0x1], 1 }
 0x5d1   :  { %1436 = vsyncpa [#allocation6], 1 }
 0x5d2   :  { %1438 = vsyncpa [#allocation6 + $0x1], 1 }
 0x5d3   :  { %1439 = vsyncpa [#allocation9], 1 }
 0x5d4   :  { %1440 = vsyncpa [#allocation12], 1 }
 0x5d5   :  { %1441 = vsyncpa [#allocation15], 1 }
 0x5d6   :  { %1442 = vsyncpa [#allocation4], 1 }
 0x5d7   :  { %1444 = vsyncpa [#allocation4 + $0x1], 1 }
 0x5d8   :  { %1445 = vsyncpa [#allocation18], 1 }
 0x5d9   :  { %1447 = vsyncpa [#allocation18 + $0x1], 1 }

</bundles_post_ra>
